<compile_context>
chip_gen: v7x
topology: tpu7x:2x2x1
jax: 0.10.0
libtpu: 0.0.40
codegen_flags: <defaults>
</compile_context>

<pallas_src>
import functools

import jax
import jax.numpy as jnp
from jax.experimental import pallas as pl
from jax.experimental.pallas import tpu as pltpu


def _dist_power(dist, power):
    """|k - gt| ** power with integer / half-integer fast paths."""
    p = float(power)
    if p == int(p) and 0 <= int(p) <= 8:
        ip = int(p)
        if ip == 0:
            return jnp.ones_like(dist)
        w = dist
        for _ in range(ip - 1):          # VPU multiplies only
            w = w * dist
        return w
    if 2.0 * p == int(2.0 * p) and 0.0 < p <= 8.5:
        ip = int(p)                      # floor; fractional part is 0.5
        w = jnp.sqrt(dist)               # one EUP op
        for _ in range(ip):
            w = w * dist
        return w
    return jnp.power(dist, jnp.float32(p))   # fallback: exp+log on the EUP


def _cdw_loss_kernel(logits_ref, gt_ref, out_ref, acc_ref, *,
                     power, n_rows, tile_rows):
    p = pl.program_id(0)
    j = pl.program_id(1)
    nsteps = pl.num_programs(1)

    @pl.when(j == 0)
    def _():
        acc_ref[...] = jnp.zeros_like(acc_ref)

    x = logits_ref[...].astype(jnp.float32)          # (tb, C), upcast in-kernel
    gt = gt_ref[...]                                 # (tb, 1) int32

    # Numerically stable, divide-free:
    #   -log(max(1 - e/S, 1e-4)) == log(S) - log(max(S - e, 1e-4 * S))
    m = jnp.max(x, axis=1, keepdims=True)
    e = jnp.exp(x - m)
    s = jnp.sum(e, axis=1, keepdims=True)            # (tb, 1)
    log_loss = jnp.log(s) - jnp.log(jnp.maximum(s - e, jnp.float32(1e-4) * s))

    k = jax.lax.broadcasted_iota(jnp.int32, x.shape, 1)
    dist = jnp.abs(k - gt).astype(jnp.float32)
    w = _dist_power(dist, power)

    loss_rows = jnp.sum(log_loss * w, axis=1, keepdims=True)   # (tb, 1)

    # Mask padded / out-of-range rows BEFORE accumulating across rows.
    row0 = (p * nsteps + j) * tile_rows
    row = row0 + jax.lax.broadcasted_iota(jnp.int32, loss_rows.shape, 0)
    acc_ref[...] += jnp.where(row < n_rows, loss_rows, jnp.float32(0.0))

    @pl.when(j == nsteps - 1)
    def _():
        # One cross-sublane reduce + one lane-dense (8,128) store per core.
        out_ref[...] = jnp.full(out_ref.shape, jnp.sum(acc_ref[...]),
                                dtype=jnp.float32)


def _plan_tiles(b, c, in_itemsize):
    # Sublane-packing alignment for the input dtype (f32:8, bf16:16, int8:32).
    align = 8 * max(1, 4 // in_itemsize)
    # Size on the dominant f32 working set: double-buffered native-dtype input
    # tile plus ~5 live f32 (tb, C) temporaries in the body.
    budget = 20 * 1024 * 1024
    per_row = c * (2 * in_itemsize + 5 * 4)
    tb = max(align, (budget // max(1, per_row)) // align * align)

    num_parallel = 2 if b >= 128 else 1     # v7x 2-TC split; harmless on 1-TC
    rows_per_p = -(-b // num_parallel)      # cdiv

    if num_parallel == 1 and tb >= b:
        tb = b                              # single tile == full array dims
    else:
        tb = min(tb, -(-rows_per_p // align) * align)
    steps = -(-rows_per_p // tb)
    return num_parallel, steps, tb


def class_distance_weighted_loss(model_output, ground_truth, n_classes,
                                 alpha=2.0, reduction="mean"):
    """model_output: (B, n_classes) float; ground_truth: (B,) int."""
    if reduction not in ("mean", "sum"):
        raise ValueError("Undefined reduction type: " + str(reduction))
    b, c = model_output.shape
    assert c == n_classes
    gt2d = ground_truth.astype(jnp.int32).reshape(b, 1)

    num_parallel, steps, tb = _plan_tiles(b, c, model_output.dtype.itemsize)

    kernel = functools.partial(_cdw_loss_kernel, power=alpha, n_rows=b,
                               tile_rows=tb)

    partials = pl.pallas_call(
        kernel,
        out_shape=jax.ShapeDtypeStruct((num_parallel, 8, 128), jnp.float32),
        grid_spec=pltpu.PrefetchScalarGridSpec(
            num_scalar_prefetch=0,
            grid=(num_parallel, steps),
            in_specs=[
                pl.BlockSpec((tb, c), lambda p, j: (p * steps + j, 0)),
                pl.BlockSpec((tb, 1), lambda p, j: (p * steps + j, 0)),
            ],
            out_specs=pl.BlockSpec((1, 8, 128), lambda p, j: (p, 0, 0)),
            scratch_shapes=[pltpu.VMEM((tb, 1), jnp.float32)],
        ),
        compiler_params=pltpu.CompilerParams(
            dimension_semantics=("parallel", "arbitrary"),
            vmem_limit_bytes=48 * 1024 * 1024),
    )(model_output, gt2d)

    total = jnp.sum(partials[:, 0, 0])
    if reduction == "mean":
        total = total / jnp.float32(b)
    return total


def _reference(model_output, ground_truth, n_classes, alpha=2.0,
               reduction="mean"):
    sm = jax.nn.softmax(model_output.astype(jnp.float32), axis=1)
    k = jnp.arange(n_classes)[None, :]
    w = jnp.abs(k - ground_truth[:, None]).astype(jnp.float32) ** alpha
    rev = jnp.maximum(1.0 - sm, 1e-4)
    loss = jnp.sum(-jnp.log(rev) * w, axis=1)
    return jnp.mean(loss) if reduction == "mean" else jnp.sum(loss)


if __name__ == "__main__":
    key = jax.random.PRNGKey(0)
    k0, k1, k2 = jax.random.split(key, 3)

    # Shapes from the module's script: batch=4, n_classes=3.
    n_classes = 3
    ground_truth = jnp.array([2, 0, 1, 2], dtype=jnp.int32)
    batch = ground_truth.shape[0]
    model_output = jax.random.normal(k0, (batch, n_classes), dtype=jnp.float32)

    out = jax.block_until_ready(
        class_distance_weighted_loss(model_output, ground_truth,
                                     n_classes=n_classes, alpha=2.0,
                                     reduction="mean"))
    ref = _reference(model_output, ground_truth, n_classes, alpha=2.0)
    assert jnp.allclose(out, ref, rtol=1e-5, atol=1e-5), (out, ref)

    # Second check: exercises the 2-core "parallel" split, a ragged last tile,
    # the half-integer-alpha sqrt fast path and reduction='sum'.
    b2, c2 = 150, 37
    logits2 = jax.random.normal(k1, (b2, c2), dtype=jnp.float32)
    gt2 = jax.random.randint(k2, (b2,), 0, c2, dtype=jnp.int32)
    out2 = jax.block_until_ready(
        class_distance_weighted_loss(logits2, gt2, n_classes=c2, alpha=2.5,
                                     reduction="sum"))
    ref2 = _reference(logits2, gt2, c2, alpha=2.5, reduction="sum")
    assert jnp.allclose(out2, ref2, rtol=1e-4, atol=1e-3), (out2, ref2)

    print("KERNEL_OK")
</pallas_src>

<mosaic_0001>
module attributes {stable_mosaic.version = 11 : i64} {
  func.func @_cdw_loss_kernel(%arg0: i32, %arg1: i32, %arg2: memref<4x3xf32, #tpu.memory_space<vmem>>, %arg3: memref<4x1xi32, #tpu.memory_space<vmem>>, %arg4: memref<1x8x128xf32, #tpu.memory_space<vmem>>, %arg5: memref<4x1xf32, #tpu.memory_space<vmem>>) attributes {dimension_semantics = [#tpu.dimension_semantics<parallel>, #tpu.dimension_semantics<arbitrary>], iteration_bounds = array<i64: 1, 1>, scalar_prefetch = 0 : i64, scratch_operands = 1 : i64, tpu.core_type = #tpu.core_type<tc>, window_params = [{transform_indices = @transform_0, window_bounds = array<i64: 4, 3>}, {transform_indices = @transform_1, window_bounds = array<i64: 4, 1>}, {transform_indices = @transform_2, window_bounds = array<i64: 1, 8, 128>}]} {
    %c0_i32 = arith.constant 0 : i32
    %0 = arith.cmpi eq, %arg1, %c0_i32 : i32
    %1 = arith.extui %0 : i1 to i32
    %c0_i32_0 = arith.constant 0 : i32
    %2 = arith.cmpi ne, %1, %c0_i32_0 : i32
    scf.if %2 {
      %cst_15 = arith.constant 0.000000e+00 : f32
      %47 = vector.broadcast %cst_15 : f32 to vector<4x1xf32>
      %c0_16 = arith.constant 0 : index
      %c0_17 = arith.constant 0 : index
      %48 = vector.load %arg5[%c0_16, %c0_17] : memref<4x1xf32, #tpu.memory_space<vmem>>, vector<4x1xf32>
      tpu.vector_store %arg5[%c0_16, %c0_17], %47 {strides = array<i32>} : memref<4x1xf32, #tpu.memory_space<vmem>>, vector<4x1xf32>,
    } else {
    }
    %c0 = arith.constant 0 : index
    %c0_1 = arith.constant 0 : index
    %3 = vector.load %arg2[%c0, %c0_1] : memref<4x3xf32, #tpu.memory_space<vmem>>, vector<4x3xf32>
    %c0_2 = arith.constant 0 : index
    %c0_3 = arith.constant 0 : index
    %4 = vector.load %arg3[%c0_2, %c0_3] : memref<4x1xi32, #tpu.memory_space<vmem>>, vector<4x1xi32>
    %cst = arith.constant dense<0xFF800000> : vector<4xf32>
    %5 = vector.multi_reduction <maximumf>, %3, %cst [1] : vector<4x3xf32> to vector<4xf32>
    %6 = vector.shape_cast %5 : vector<4xf32> to vector<4x1xf32>
    %7 = vector.broadcast %6 : vector<4x1xf32> to vector<4x3xf32>
    %8 = arith.subf %3, %7 : vector<4x3xf32>
    %9 = math.exp %8 : vector<4x3xf32>
    %cst_4 = arith.constant dense<0.000000e+00> : vector<4xf32>
    %10 = vector.multi_reduction <add>, %9, %cst_4 [1] : vector<4x3xf32> to vector<4xf32>
    %11 = vector.shape_cast %10 : vector<4xf32> to vector<4x1xf32>
    %12 = math.log %11 : vector<4x1xf32>
    %13 = vector.broadcast %11 : vector<4x1xf32> to vector<4x3xf32>
    %14 = arith.subf %13, %9 : vector<4x3xf32>
    %cst_5 = arith.constant 9.99999974E-5 : f32
    %15 = vector.broadcast %cst_5 : f32 to vector<4x1xf32>
    %16 = arith.mulf %15, %11 : vector<4x1xf32>
    %17 = vector.broadcast %16 : vector<4x1xf32> to vector<4x3xf32>
    %18 = arith.maximumf %14, %17 : vector<4x3xf32>
    %19 = math.log %18 : vector<4x3xf32>
    %20 = vector.broadcast %12 : vector<4x1xf32> to vector<4x3xf32>
    %21 = arith.subf %20, %19 : vector<4x3xf32>
    %22 = tpu.iota {dimensions = array<i32: 1>} : vector<4x3xi32>
    %23 = vector.broadcast %4 : vector<4x1xi32> to vector<4x3xi32>
    %24 = arith.subi %22, %23 : vector<4x3xi32>
    %25 = math.absi %24 : vector<4x3xi32>
    %26 = arith.sitofp %25 : vector<4x3xi32> to vector<4x3xf32>
    %27 = arith.mulf %26, %26 : vector<4x3xf32>
    %28 = arith.mulf %21, %27 : vector<4x3xf32>
    %cst_6 = arith.constant dense<0.000000e+00> : vector<4xf32>
    %29 = vector.multi_reduction <add>, %28, %cst_6 [1] : vector<4x3xf32> to vector<4xf32>
    %30 = vector.shape_cast %29 : vector<4xf32> to vector<4x1xf32>
    %c1_i32 = arith.constant 1 : i32
    %31 = arith.muli %arg0, %c1_i32 : i32
    %32 = arith.addi %31, %arg1 : i32
    %c4_i32 = arith.constant 4 : i32
    %33 = arith.muli %32, %c4_i32 : i32
    %34 = tpu.iota {dimensions = array<i32: 0>} : vector<4x1xi32>
    %35 = vector.broadcast %33 : i32 to vector<4x1xi32>
    %36 = arith.addi %35, %34 : vector<4x1xi32>
    %c0_7 = arith.constant 0 : index
    %c0_8 = arith.constant 0 : index
    %37 = vector.load %arg5[%c0_7, %c0_8] : memref<4x1xf32, #tpu.memory_space<vmem>>, vector<4x1xf32>
    %c4_i32_9 = arith.constant 4 : i32
    %38 = vector.broadcast %c4_i32_9 : i32 to vector<4x1xi32>
    %39 = arith.cmpi slt, %36, %38 : vector<4x1xi32>
    %cst_10 = arith.constant 0.000000e+00 : f32
    %40 = vector.broadcast %cst_10 : f32 to vector<4x1xf32>
    %41 = arith.select %39, %30, %40 : vector<4x1xi1>, vector<4x1xf32>
    %42 = arith.addf %37, %41 : vector<4x1xf32>
    %c0_11 = arith.constant 0 : index
    %c0_12 = arith.constant 0 : index
    %43 = vector.load %arg5[%c0_11, %c0_12] : memref<4x1xf32, #tpu.memory_space<vmem>>, vector<4x1xf32>
    tpu.vector_store %arg5[%c0_11, %c0_12], %42 {strides = array<i32>} : memref<4x1xf32, #tpu.memory_space<vmem>>, vector<4x1xf32>,
    %c0_i32_13 = arith.constant 0 : i32
    %44 = arith.cmpi eq, %arg1, %c0_i32_13 : i32
    %45 = arith.extui %44 : i1 to i32
    %c0_i32_14 = arith.constant 0 : i32
    %46 = arith.cmpi ne, %45, %c0_i32_14 : i32
    scf.if %46 {
      %c0_15 = arith.constant 0 : index
      %c0_16 = arith.constant 0 : index
      %47 = vector.load %arg5[%c0_15, %c0_16] : memref<4x1xf32, #tpu.memory_space<vmem>>, vector<4x1xf32>
      %48 = vector.shape_cast %47 : vector<4x1xf32> to vector<1x4x1xf32>
      %cst_17 = arith.constant dense<0.000000e+00> : vector<1xf32>
      %49 = vector.multi_reduction <add>, %48, %cst_17 [1, 2] : vector<1x4x1xf32> to vector<1xf32>
      %50 = vector.shape_cast %49 : vector<1xf32> to vector<1x1x1xf32>
      %51 = vector.extract %50[0, 0, 0] : f32 from vector<1x1x1xf32>
      %52 = vector.broadcast %51 : f32 to vector<1x8x128xf32>
      %c0_18 = arith.constant 0 : index
      %c0_19 = arith.constant 0 : index
      %c0_20 = arith.constant 0 : index
      %53 = vector.load %arg4[%c0_18, %c0_19, %c0_20] : memref<1x8x128xf32, #tpu.memory_space<vmem>>, vector<1x8x128xf32>
      tpu.vector_store %arg4[%c0_18, %c0_19, %c0_20], %52 {strides = array<i32>} : memref<1x8x128xf32, #tpu.memory_space<vmem>>, vector<1x8x128xf32>,
    } else {
    }
    return
  }
  func.func @transform_0(%arg0: i32, %arg1: i32) -> (i32, i32) {
    %c1_i32 = arith.constant 1 : i32
    %0 = arith.muli %arg0, %c1_i32 : i32
    %1 = arith.addi %0, %arg1 : i32
    %c0_i32 = arith.constant 0 : i32
    %c0_i32_0 = arith.constant 0 : i32
    return %1, %c0_i32 : i32, i32
  }
  func.func @transform_1(%arg0: i32, %arg1: i32) -> (i32, i32) {
    %c1_i32 = arith.constant 1 : i32
    %0 = arith.muli %arg0, %c1_i32 : i32
    %1 = arith.addi %0, %arg1 : i32
    %c0_i32 = arith.constant 0 : i32
    %c0_i32_0 = arith.constant 0 : i32
    return %1, %c0_i32 : i32, i32
  }
  func.func @transform_2(%arg0: i32, %arg1: i32) -> (i32, i32, i32) {
    %c0_i32 = arith.constant 0 : i32
    %c0_i32_0 = arith.constant 0 : i32
    %c0_i32_1 = arith.constant 0 : i32
    return %arg0, %c0_i32, %c0_i32_0 : i32, i32, i32
  }
}

</mosaic_0001>

<bundles_post_ra>
// kernel: tpu_custom_call.1
= control target key start
LH: loop header
LB: loop body
LE: loop exit
PB: predicated region body
PF: predicated region fallthrough
CT: control target
= control target key end

     0   :  { %vm54_vm0 = vcmask 19456   ;;  %s218_s0 = inlined_call_operand.vmem [shape: f32[4,3], index: 0, kind: input, shape index: {}]   ;;  %s219_s1 = inlined_call_operand.vmem [shape: s32[4,1], index: 1, kind: input, shape index: {}]   ;;  %s220_s2 = inlined_call_operand.hbm [shape: f32[1,8,128], index: 2, kind: output, shape index: {}]  }
   0x1   :  { %v52_v0 = vld [vmem:[%s218_s0] sm:$0xf] }
   0x2   :  { %7 = vsyncpa [#allocation4], 0  ;;  %v55_v1 = vsel %vm54_vm0, %v52_v0, -inf  ;;  %v53_v2 = vld [vmem:[%s219_s1] sm:$0xf]  ;;  %v179_v3 = vmov 0   ;;  %v72_v9 = vlaneseq }
   0x3   :  { %56 = vmax.xlane.f32.xlu0 %v55_v1  ;;  %147 = vset.pattern.permute.xlu1 %v179_v3  ;;  %vm50_vm1 = vcmask 3072   ;;  %v180_v28 = vmov 0.0   ;;  %s181_s0 = smov [#allocation3]  }
   0x4   :  { %148 = vset.pattern.permute.xlu0 %v179_v3  ;;  %75 = vperm.xlu1 %147, %v53_v2   ;;  %v73_v10 = vand.u32 127, %v72_v9  ;;  %51 = vst.msk [vmem:[#allocation2] sm:$0xf] %vm50_vm1, %v180_v28  ;;  %v90_v29 = vshrl.u32 %v72_v9, 7  ;;  %s121_s1 = sshll.u32 %s181_s0, 4  ;;  %s122_s1 = int_to_ptr.vmem [resolvable:$true] %s121_s1 }
   0x5   :  { %s155_s14 = scalar_lea.vmem %s122_s1, 128  ;;  %p160_p1 = scmp.lt.s32.totalorder %s122_s1, %s122_s1 }
   0x6   :  { %vm94_vm2 = vcmp.lt.s32.totalorder %v90_v29, 4  ;;  %p156_p0 = scmp.ne.s32.totalorder %s122_s1, %s155_s14  ;;  %p161_p2 = scmp.lt.s32.totalorder %s155_s14, %s155_s14 }
   0x8   :  { %p162_p3 = por %p161_p2, %p160_p1 }
   0xa   :  { %p163_p4 = pnand %p162_p3, %p156_p0 }
   0xb   :  { %v93_v30 = vld [vmem:[#allocation2] sm:$0xf] }
  0x83   :  { %v76_v11 = vpop.permute.xlu1 %75 }
  0x84   :  { %v77_v15 = vsub.s32 %v73_v10, %v76_v11 }
  0x86   :  { %v79_v17 = vsub.s32 0, %v77_v15 }
  0x88   :  { %v141_v18 = vmin.u32 %v79_v17, %v77_v15 }
  0x8a   :  { %v81_v20 = vcvt.s32.f32 %v141_v18 }
  0x8c   :  { %v82_v24 = vmul.f32 %v81_v20, %v81_v20 }
  0x90   :  { %v57_v4 = vpop.xlane.xlu0 %56 }
  0x91   :  { %v58_v5 = vsub.f32 %v52_v0, %v57_v4 }
  0x93   :  { %v59_v6 = vmul.f32 1.442695, %v58_v5 }
  0x95   :  { %149 = vpow2.f32 %v59_v6 }
  0x9f   :  { %v150_v7 = vpop.eup %149 }
  0xa0   :  { %v61_v8 = vsel %vm54_vm0, %v150_v7, 0.0 }
  0xa1   :  { %62 = vadd.xlane.f32.xlu0 %v61_v8 }
 0x12e   :  { %v63_v12 = vpop.xlane.xlu0 %62 }
 0x12f   :  { %v66_v13 = vsub.f32 %v63_v12, %v150_v7  ;;  %v67_v14 = vmul.f32 0.0001, %v63_v12  ;;  %151 = vlog2.f32 %v63_v12 }
 0x131   :  { %v68_v16 = vmax.f32 %v66_v13, %v67_v14 }
 0x133   :  { %153 = vlog2.f32 %v68_v16 }
 0x139   :  { %v152_v19 = vpop.eup %151 }
 0x13a   :  { %v65_v22 = vmul.f32 0.6931472, %v152_v19 }
 0x13d   :  { %v154_v21 = vpop.eup %153 }
 0x13e   :  { %v70_v23 = vmul.f32 0.6931472, %v154_v21 }
 0x140   :  { %v71_v25 = vsub.f32 %v65_v22, %v70_v23 }
 0x142   :  { %v83_v26 = vmul.f32 %v82_v24, %v71_v25 }
 0x144   :  { %v84_v27 = vsel %vm54_vm0, %v83_v26, 0.0 }
 0x145   :  { %85 = vadd.xlane.f32.xlu1 %v84_v27 }
 0x1d2   :  { %v86_v31 = vpop.xlane.xlu1 %85 }
 0x1d3   :  { %v95_v32 = vsel %vm94_vm2, %v86_v31, 0.0 }
 0x1d4   :  { %v96_v33 = vadd.f32 %v95_v32, %v93_v30 }
 0x1d6   :  { %98 = vst.msk [vmem:[#allocation2] sm:$0xf] %vm50_vm1, %v96_v33 }
 0x1dd   :  { %v102_v34 = vld [vmem:[#allocation2] sm:$0xf] }
 0x1de   :  { %v103_v35 = vsel %vm50_vm1, %v102_v34, 0.0 }
 0x1df   :  { %104 = vadd.xlane.f32.xlu0 %v103_v35 }
 0x26c   :  { %v105_v36 = vpop.xlane.xlu0 %104 }
 0x26d   :  { %v106_v37 = vrot.slane %v105_v36, 4 }
 0x26f   :  { %v107_v38 = vadd.f32 %v106_v37, %v105_v36 }
 0x271   :  { %v108_v39 = vrot.slane %v107_v38, 2 }
 0x273   :  { %v109_v40 = vadd.f32 %v108_v39, %v107_v38 }
 0x275   :  { %v110_v41 = vrot.slane %v109_v40, 1 }
 0x277   :  { %v111_v42 = vadd.f32 %v110_v41, %v109_v40 }
 0x279   :  { %142 = vpush %v111_v42 }
 0x2aa   :  { %s143_s13 = spop %142 }
 0x2ab   :  { %v113_v43 = vstv %s143_s13 }
 0x2ac   :  { %114 = vst [vmem:[#allocation3] sm:$0xff] %v113_v43 }
 0x2ad   :  { %166 = shalt.err (!%p163_p4)
}
 0x2ae   :  { %s167_s17 = scalar_lea.hbm %s220_s2, 128 }
 0x2af   :  { %p168_p5 = scmp.ne.s32.totalorder %s220_s2, %s167_s17  ;;  %p171_p6 = scmp.lt.u32.totalorder %s167_s17, %s220_s2 }
 0x2b1   :  { %p173_p7 = pnand %p171_p6, %p168_p5 }
 0x2b3   :  { %176 = shalt.err (!%p173_p7)
}
 0x2b4   :  { %124 = dma.vmem_to_hbm [thread:$0]  %s122_s1, 128, %s220_s2, [#allocation4]  }
 0x2b5   :  { %177 = dma.done.wait [#allocation4], 128  }
 0x2b6   :  { %178 = vsyncadd [#allocation4], 4294967168 }
 0x2b7   :  { %128 = vsyncpa [#allocation4], 1 }

</bundles_post_ra>
